<compile_context>
chip_gen: v5e
topology: v5e:2x2
jax: 0.10.0
libtpu: 0.0.40
codegen_flags: <defaults>
</compile_context>

<pallas_src>
import jax
import jax.numpy as jnp
from jax import lax
from jax.experimental import pallas as pl
from jax.experimental.pallas import tpu as pltpu

INPUT_SIZE = 32
HIDDEN = 16
NUM_CLASSES = 5

_MIN_TILE_B = 512     # multiple of 128 (lane-dense out) and of 8 (sublanes)
_MAX_TILE_B = 16384   # ~17 MiB double-buffered VMEM incl. lane padding of x


def _tile_b_for(batch):
    """Largest safe batch tile, with >=2 grid steps once the batch is big
    enough (keeps both v7x TensorCores busy via the 'parallel' grid axis)."""
    target = -(-batch // 2)                              # cdiv(B, 2)
    target = -(-target // _MIN_TILE_B) * _MIN_TILE_B     # round up to 512
    return max(_MIN_TILE_B, min(_MAX_TILE_B, target))


def _fused_affine_softmax_kernel(wt_ref, bt_ref, x_ref, out_ref):
    # (5, 32) . (TILE_B, 32)^T -> (5, TILE_B) on the MXU, f32 accumulate.
    # Contracting the last dims of both operands keeps x in its natural
    # batch-major layout (no wrapper transpose); any relayout Mosaic inserts
    # rides the XLU slot, which has slack since DMA is the binding resource.
    logits = lax.dot_general(
        wt_ref[...], x_ref[...],
        dimension_numbers=(((1,), (1,)), ((), ())),
        preferred_element_type=jnp.float32,
    )
    logits = logits + bt_ref[...]                      # (5, 1) bias, lane-broadcast
    # Numerically stable softmax over the class axis (sublanes, per-lane).
    m = jnp.max(logits, axis=0, keepdims=True)         # (1, TILE_B)
    e = jnp.exp(logits - m)                            # EUP
    s = jnp.sum(e, axis=0, keepdims=True)              # (1, TILE_B)
    out_ref[...] = e / s                               # exact divide: free (HBM-bound)


def _forward_pallas_t(x, w1, b1, w2, b2):
    """Feature-major probs: softmax(linear2(linear1(x))) as (NUM_CLASSES, B)."""
    B = x.shape[0]
    tile_b = _tile_b_for(B)

    # Fuse the two activation-free linears at trace time (outside the kernel).
    w_fused = jnp.dot(w1, w2)          # (32, 5)
    b_fused = jnp.dot(b1, w2) + b2     # (1, 5)
    wt = w_fused.T                     # (5, 32)
    bt = b_fused.T                     # (5, 1)

    return pl.pallas_call(
        _fused_affine_softmax_kernel,
        out_shape=jax.ShapeDtypeStruct((NUM_CLASSES, B), jnp.float32),
        grid=(pl.cdiv(B, tile_b),),                    # ragged last block OK
        in_specs=[
            pl.BlockSpec((NUM_CLASSES, INPUT_SIZE), lambda i: (0, 0)),  # VMEM-resident
            pl.BlockSpec((NUM_CLASSES, 1), lambda i: (0, 0)),           # VMEM-resident
            pl.BlockSpec((tile_b, INPUT_SIZE), lambda i: (i, 0)),       # natural layout
        ],
        out_specs=pl.BlockSpec((NUM_CLASSES, tile_b), lambda i: (0, i)),  # lane-dense
        compiler_params=pltpu.CompilerParams(
            dimension_semantics=("parallel",),         # shard batch tiles across TCs
            vmem_limit_bytes=32 * 1024 * 1024,         # headroom for the padded x tile
        ),
        cost_estimate=pl.CostEstimate(
            flops=2 * B * INPUT_SIZE * NUM_CLASSES,
            transcendentals=B * NUM_CLASSES,
            bytes_accessed=4 * (B * INPUT_SIZE + B * NUM_CLASSES
                                + NUM_CLASSES * (INPUT_SIZE + 1)),
        ),
    )(wt, bt, x)


@jax.jit
def _probs_fn(x, w1, b1, w2, b2):
    # Transpose only the tiny (5, B) result back to the module's (B, 5) layout.
    return _forward_pallas_t(x, w1, b1, w2, b2).T


@jax.jit
def _loss_fn(x, w1, b1, w2, b2, y):
    # Consume the feature-major (5, B) result directly (no extra relayout).
    probs_t = _forward_pallas_t(x, w1, b1, w2, b2)
    # torch.nn.functional.cross_entropy(y_pred, y) with integer labels treats
    # y_pred as logits -> log_softmax then NLL, mean-reduced.  The torch module
    # passes already-softmaxed probabilities, so this double softmax
    # intentionally mirrors the reference semantics.
    log_probs = jax.nn.log_softmax(probs_t, axis=0)            # (5, B)
    nll = -jnp.take_along_axis(log_probs, y[None, :], axis=0)[0]
    return jnp.mean(nll)


def torch_model_forward(x, w1, b1, w2, b2, y=None):
    """Pallas implementation of TorchModel.forward (probs if y is None, else loss)."""
    if y is None:
        return _probs_fn(x, w1, b1, w2, b2)
    return _loss_fn(x, w1, b1, w2, b2, y)


def init_params(key):
    k1, k2, k3, k4 = jax.random.split(key, 4)
    # Deterministic uniform init (PyTorch-Linear-like scale); stored as (in, out).
    lim1 = 1.0 / jnp.sqrt(INPUT_SIZE)
    lim2 = 1.0 / jnp.sqrt(HIDDEN)
    w1 = jax.random.uniform(k1, (INPUT_SIZE, HIDDEN), jnp.float32, -lim1, lim1)
    b1 = jax.random.uniform(k2, (1, HIDDEN), jnp.float32, -lim1, lim1)
    w2 = jax.random.uniform(k3, (HIDDEN, NUM_CLASSES), jnp.float32, -lim2, lim2)
    b2 = jax.random.uniform(k4, (1, NUM_CLASSES), jnp.float32, -lim2, lim2)
    return w1, b1, w2, b2


if __name__ == "__main__":
    key = jax.random.PRNGKey(0)
    kx, ky, kp, kx2 = jax.random.split(key, 4)
    w1, b1, w2, b2 = init_params(kp)

    # Small demo batch (x is (B, input_size), matching the torch module).
    B = 8
    x = jax.random.normal(kx, (B, INPUT_SIZE), jnp.float32)
    y = jax.random.randint(ky, (B,), 0, NUM_CLASSES)

    probs = jax.block_until_ready(torch_model_forward(x, w1, b1, w2, b2))
    ref = jax.nn.softmax((x @ w1 + b1) @ w2 + b2, axis=-1)
    assert probs.shape == (B, NUM_CLASSES)
    # Tolerance covers MXU f32 matmul precision + trace-time weight fusion.
    assert jnp.allclose(probs, ref, atol=1e-3, rtol=1e-3)
    # Exact divide in the epilogue -> rows sum to 1 to f32 precision.
    assert jnp.allclose(jnp.sum(probs, axis=-1), 1.0, atol=1e-5)

    # Larger batch exercises the multi-tile grid + ragged-last-block path.
    B2 = 600
    x2 = jax.random.normal(kx2, (B2, INPUT_SIZE), jnp.float32)
    probs2 = jax.block_until_ready(torch_model_forward(x2, w1, b1, w2, b2))
    ref2 = jax.nn.softmax((x2 @ w1 + b1) @ w2 + b2, axis=-1)
    assert probs2.shape == (B2, NUM_CLASSES)
    assert jnp.allclose(probs2, ref2, atol=1e-3, rtol=1e-3)
    assert jnp.allclose(jnp.sum(probs2, axis=-1), 1.0, atol=1e-5)

    # Training path (y given): scalar cross-entropy loss (torch semantics).
    loss = jax.block_until_ready(torch_model_forward(x, w1, b1, w2, b2, y))
    assert loss.shape == () and jnp.isfinite(loss)

    print("KERNEL_OK")
</pallas_src>

<mosaic_0001>
module attributes {stable_mosaic.version = 11 : i64} {
  func.func @_fused_affine_softmax_kernel(%arg0: i32, %arg1: memref<5x32xf32, #tpu.memory_space<vmem>>, %arg2: memref<5x1xf32, #tpu.memory_space<vmem>>, %arg3: memref<512x32xf32, #tpu.memory_space<vmem>>, %arg4: memref<5x512xf32, #tpu.memory_space<vmem>>) attributes {dimension_semantics = [#tpu.dimension_semantics<parallel>], iteration_bounds = array<i64: 1>, scalar_prefetch = 0 : i64, scratch_operands = 0 : i64, tpu.core_type = #tpu.core_type<tc>, window_params = [{pipeline_mode = #tpu.pipeline_mode<synchronous>, transform_indices = @transform_0, window_bounds = array<i64: 5, 32>}, {pipeline_mode = #tpu.pipeline_mode<synchronous>, transform_indices = @transform_1, window_bounds = array<i64: 5, 1>}, {transform_indices = @transform_2, window_bounds = array<i64: 512, 32>}, {transform_indices = @transform_3, window_bounds = array<i64: 5, 512>}]} {
    %c0 = arith.constant 0 : index
    %c0_0 = arith.constant 0 : index
    %0 = vector.load %arg1[%c0, %c0_0] : memref<5x32xf32, #tpu.memory_space<vmem>>, vector<5x32xf32>
    %c0_1 = arith.constant 0 : index
    %c0_2 = arith.constant 0 : index
    %1 = vector.load %arg3[%c0_1, %c0_2] : memref<512x32xf32, #tpu.memory_space<vmem>>, vector<512x32xf32>
    %cst = arith.constant dense<0.000000e+00> : vector<5x512xf32>
    %2 = tpu.matmul %0, %1, %cst {dimension_numbers = #tpu.dot_dimension_numbers<[1], [1], [0], [0], [0, 0, 1, 0], [], []>} : vector<5x32xf32>, vector<512x32xf32>, vector<5x512xf32> -> vector<5x512xf32>
    %c0_3 = arith.constant 0 : index
    %c0_4 = arith.constant 0 : index
    %3 = vector.load %arg2[%c0_3, %c0_4] : memref<5x1xf32, #tpu.memory_space<vmem>>, vector<5x1xf32>
    %4 = vector.broadcast %3 : vector<5x1xf32> to vector<5x512xf32>
    %5 = arith.addf %2, %4 : vector<5x512xf32>
    %cst_5 = arith.constant dense<0xFF800000> : vector<512xf32>
    %6 = vector.multi_reduction <maximumf>, %5, %cst_5 [0] : vector<5x512xf32> to vector<512xf32>
    %7 = vector.shape_cast %6 : vector<512xf32> to vector<1x512xf32>
    %8 = vector.broadcast %7 : vector<1x512xf32> to vector<5x512xf32>
    %9 = arith.subf %5, %8 : vector<5x512xf32>
    %10 = math.exp %9 : vector<5x512xf32>
    %cst_6 = arith.constant dense<0.000000e+00> : vector<512xf32>
    %11 = vector.multi_reduction <add>, %10, %cst_6 [0] : vector<5x512xf32> to vector<512xf32>
    %12 = vector.shape_cast %11 : vector<512xf32> to vector<1x512xf32>
    %13 = vector.broadcast %12 : vector<1x512xf32> to vector<5x512xf32>
    %14 = arith.divf %10, %13 : vector<5x512xf32>
    %c0_7 = arith.constant 0 : index
    %c0_8 = arith.constant 0 : index
    %15 = vector.load %arg4[%c0_7, %c0_8] : memref<5x512xf32, #tpu.memory_space<vmem>>, vector<5x512xf32>
    tpu.vector_store %arg4[%c0_7, %c0_8], %14 {strides = array<i32>} : memref<5x512xf32, #tpu.memory_space<vmem>>, vector<5x512xf32>,
    return
  }
  func.func @transform_0(%arg0: i32) -> (i32, i32) {
    %c0_i32 = arith.constant 0 : i32
    %c0_i32_0 = arith.constant 0 : i32
    %c0_i32_1 = arith.constant 0 : i32
    return %c0_i32, %c0_i32_0 : i32, i32
  }
  func.func @transform_1(%arg0: i32) -> (i32, i32) {
    %c0_i32 = arith.constant 0 : i32
    %c0_i32_0 = arith.constant 0 : i32
    %c0_i32_1 = arith.constant 0 : i32
    return %c0_i32, %c0_i32_0 : i32, i32
  }
  func.func @transform_2(%arg0: i32) -> (i32, i32) {
    %c0_i32 = arith.constant 0 : i32
    %c0_i32_0 = arith.constant 0 : i32
    return %arg0, %c0_i32 : i32, i32
  }
  func.func @transform_3(%arg0: i32) -> (i32, i32) {
    %c0_i32 = arith.constant 0 : i32
    %c0_i32_0 = arith.constant 0 : i32
    return %c0_i32, %arg0 : i32, i32
  }
}

</mosaic_0001>

<bundles_post_ra>
// kernel: _probs_fn.1
= control target key start
LH: loop header
LB: loop body
LE: loop exit
PB: predicated region body
PF: predicated region fallthrough
CT: control target
= control target key end

     0   :  { %vm85_vm0 = vcmask 261120   ;;  %v621_v41 = vmov 0   ;;  %vm361_vm1 = vcmask 1044480   ;;  %s919_s0 = inlined_call_operand.vmem [shape: f32[5,32], index: 0, kind: input, shape index: {}]   ;;  %s920_s1 = inlined_call_operand.vmem [shape: f32[5,1], index: 1, kind: input, shape index: {}]   ;;  %s921_s2 = inlined_call_operand.vmem [shape: f32[8,32], index: 2, kind: input, shape index: {}]   ;;  %s922_s3 = inlined_call_operand.vmem [shape: f32[5,8], index: 3, kind: output, shape index: {}]  }
   0x1   :  { %v30_v0 = vld [vmem:[%s921_s2 + $0x78] sm:$0xff]  ;;  %v29_v4 = vld [vmem:[%s921_s2 + $0x70] sm:$0xff]  ;;  %v28_v8 = vld [vmem:[%s921_s2 + $0x68] sm:$0xff]  ;;  %604 = vset.pattern.permute.xlu0 %v621_v41 }
   0x2   :  { %v46_v1 = vld [vmem:[%s921_s2 + $0xf8] sm:$0xff]  ;;  %535 = vmatpush.xpose.msk.msra.mxu0 %vm85_vm0, %v30_v0  ;;  %v45_v5 = vld [vmem:[%s921_s2 + $0xf0] sm:$0xff]  ;;  %v44_v9 = vld [vmem:[%s921_s2 + $0xe8] sm:$0xff] }
   0x3   :  { %v62_v2 = vld [vmem:[%s921_s2 + $0x178] sm:$0xff]  ;;  %552 = vmatpush.xpose.msk.msra.mxu1 %vm85_vm0, %v46_v1  ;;  %v61_v6 = vld [vmem:[%s921_s2 + $0x170] sm:$0xff]  ;;  %v60_v10 = vld [vmem:[%s921_s2 + $0x168] sm:$0xff] }
   0x4   :  { %v78_v3 = vld [vmem:[%s921_s2 + $0x1f8] sm:$0xff]  ;;  %569 = vmatpush.xpose.msk.msra.mxu2 %vm85_vm0, %v62_v2  ;;  %v77_v7 = vld [vmem:[%s921_s2 + $0x1f0] sm:$0xff]  ;;  %v76_v11 = vld [vmem:[%s921_s2 + $0x1e8] sm:$0xff] }
   0x5   :  { %586 = vmatpush.xpose.msk.msra.mxu3 %vm85_vm0, %v78_v3  ;;  %v27_v12 = vld [vmem:[%s921_s2 + $0x60] sm:$0xff]  ;;  %v26_v16 = vld [vmem:[%s921_s2 + $0x58] sm:$0xff]  ;;  %v25_v20 = vld [vmem:[%s921_s2 + $0x50] sm:$0xff] }
   0x6   :  { %536 = vmatpush.xpose.msk.msra.mxu0 %vm85_vm0, %v29_v4  ;;  %v43_v13 = vld [vmem:[%s921_s2 + $0xe0] sm:$0xff]  ;;  %v42_v17 = vld [vmem:[%s921_s2 + $0xd8] sm:$0xff]  ;;  %v41_v21 = vld [vmem:[%s921_s2 + $0xd0] sm:$0xff] }
   0x7   :  { %553 = vmatpush.xpose.msk.msra.mxu1 %vm85_vm0, %v45_v5  ;;  %v59_v14 = vld [vmem:[%s921_s2 + $0x160] sm:$0xff]  ;;  %v58_v18 = vld [vmem:[%s921_s2 + $0x158] sm:$0xff]  ;;  %v57_v22 = vld [vmem:[%s921_s2 + $0x150] sm:$0xff] }
   0x8   :  { %570 = vmatpush.xpose.msk.msra.mxu2 %vm85_vm0, %v61_v6  ;;  %v75_v15 = vld [vmem:[%s921_s2 + $0x1e0] sm:$0xff]  ;;  %v74_v19 = vld [vmem:[%s921_s2 + $0x1d8] sm:$0xff]  ;;  %v73_v23 = vld [vmem:[%s921_s2 + $0x1d0] sm:$0xff] }
   0x9   :  { %587 = vmatpush.xpose.msk.msra.mxu3 %vm85_vm0, %v77_v7  ;;  %v24_v24 = vld [vmem:[%s921_s2 + $0x48] sm:$0xff]  ;;  %v23_v28 = vld [vmem:[%s921_s2 + $0x40] sm:$0xff]  ;;  %v22_v32 = vld [vmem:[%s921_s2 + $0x38] sm:$0xff] }
   0xa   :  { %537 = vmatpush.xpose.msk.msra.mxu0 %vm85_vm0, %v28_v8  ;;  %v40_v25 = vld [vmem:[%s921_s2 + $0xc8] sm:$0xff]  ;;  %v39_v29 = vld [vmem:[%s921_s2 + $0xc0] sm:$0xff]  ;;  %v38_v33 = vld [vmem:[%s921_s2 + $0xb8] sm:$0xff] }
   0xb   :  { %554 = vmatpush.xpose.msk.msra.mxu1 %vm85_vm0, %v44_v9  ;;  %v56_v26 = vld [vmem:[%s921_s2 + $0x148] sm:$0xff]  ;;  %v55_v30 = vld [vmem:[%s921_s2 + $0x140] sm:$0xff]  ;;  %v54_v34 = vld [vmem:[%s921_s2 + $0x138] sm:$0xff] }
   0xc   :  { %571 = vmatpush.xpose.msk.msra.mxu2 %vm85_vm0, %v60_v10  ;;  %v72_v27 = vld [vmem:[%s921_s2 + $0x1c8] sm:$0xff]  ;;  %v71_v31 = vld [vmem:[%s921_s2 + $0x1c0] sm:$0xff]  ;;  %v70_v35 = vld [vmem:[%s921_s2 + $0x1b8] sm:$0xff] }
   0xd   :  { %588 = vmatpush.xpose.msk.msra.mxu3 %vm85_vm0, %v76_v11  ;;  %v79_v36 = vld [vmem:[%s920_s1] sm:$0x1f]  ;;  %v21_v37 = vld [vmem:[%s921_s2 + $0x30] sm:$0xff]  ;;  %v20_v42 = vld [vmem:[%s921_s2 + $0x28] sm:$0xff] }
   0xe   :  { %538 = vmatpush.xpose.msk.msra.mxu0 %vm85_vm0, %v27_v12  ;;  %v37_v38 = vld [vmem:[%s921_s2 + $0xb0] sm:$0xff]  ;;  %82 = vperm.xlu0 %604, %v79_v36   ;;  %v36_v43 = vld [vmem:[%s921_s2 + $0xa8] sm:$0xff]  ;;  %v19_v46 = vld [vmem:[%s921_s2 + $0x20] sm:$0xff] }
   0xf   :  { %555 = vmatpush.xpose.msk.msra.mxu1 %vm85_vm0, %v43_v13  ;;  %v53_v39 = vld [vmem:[%s921_s2 + $0x130] sm:$0xff]  ;;  %v52_v44 = vld [vmem:[%s921_s2 + $0x128] sm:$0xff]  ;;  %v35_v47 = vld [vmem:[%s921_s2 + $0xa0] sm:$0xff] }
  0x10   :  { %572 = vmatpush.xpose.msk.msra.mxu2 %vm85_vm0, %v59_v14  ;;  %v69_v40 = vld [vmem:[%s921_s2 + $0x1b0] sm:$0xff]  ;;  %v68_v45 = vld [vmem:[%s921_s2 + $0x1a8] sm:$0xff]  ;;  %v51_v48 = vld [vmem:[%s921_s2 + $0x120] sm:$0xff] }
  0x11   :  { %589 = vmatpush.xpose.msk.msra.mxu3 %vm85_vm0, %v75_v15  ;;  %v67_v49 = vld [vmem:[%s921_s2 + $0x1a0] sm:$0xff]  ;;  %v18_v50 = vld [vmem:[%s921_s2 + $0x18] sm:$0xff]  ;;  %v17_v54 = vld [vmem:[%s921_s2 + $0x10] sm:$0xff] }
  0x12   :  { %539 = vmatpush.xpose.msk.msra.mxu0 %vm85_vm0, %v26_v16  ;;  %v34_v51 = vld [vmem:[%s921_s2 + $0x98] sm:$0xff]  ;;  %v33_v55 = vld [vmem:[%s921_s2 + $0x90] sm:$0xff]  ;;  %v16_v58 = vld [vmem:[%s921_s2 + $0x8] sm:$0xff] }
  0x13   :  { %556 = vmatpush.xpose.msk.msra.mxu1 %vm85_vm0, %v42_v17  ;;  %v50_v52 = vld [vmem:[%s921_s2 + $0x118] sm:$0xff]  ;;  %v49_v56 = vld [vmem:[%s921_s2 + $0x110] sm:$0xff]  ;;  %v32_v59 = vld [vmem:[%s921_s2 + $0x88] sm:$0xff] }
  0x14   :  { %573 = vmatpush.xpose.msk.msra.mxu2 %vm85_vm0, %v58_v18  ;;  %v66_v53 = vld [vmem:[%s921_s2 + $0x198] sm:$0xff]  ;;  %v65_v57 = vld [vmem:[%s921_s2 + $0x190] sm:$0xff]  ;;  %v48_v60 = vld [vmem:[%s921_s2 + $0x108] sm:$0xff] }
  0x15   :  { %590 = vmatpush.xpose.msk.msra.mxu3 %vm85_vm0, %v74_v19  ;;  %v64_v61 = vld [vmem:[%s921_s2 + $0x188] sm:$0xff]  ;;  %v15_v62 = vld [vmem:[%s921_s2] sm:$0xff] }
  0x16   :  { %540 = vmatpush.xpose.msk.msra.mxu0 %vm85_vm0, %v25_v20  ;;  %v31_v63 = vld [vmem:[%s921_s2 + $0x80] sm:$0xff] }
  0x17   :  { %557 = vmatpush.xpose.msk.msra.mxu1 %vm85_vm0, %v41_v21  ;;  %v47_v0 = vld [vmem:[%s921_s2 + $0x100] sm:$0xff] }
  0x18   :  { %574 = vmatpush.xpose.msk.msra.mxu2 %vm85_vm0, %v57_v22  ;;  %v63_v1 = vld [vmem:[%s921_s2 + $0x180] sm:$0xff] }
  0x19   :  { %591 = vmatpush.xpose.msk.msra.mxu3 %vm85_vm0, %v73_v23  ;;  %v14_v2 = vld [vmem:[%s919_s0] sm:$0x1f] }
  0x1a   :  { %541 = vmatpush.xpose.msk.msra.mxu0 %vm85_vm0, %v24_v24 }
  0x1b   :  { %558 = vmatpush.xpose.msk.msra.mxu1 %vm85_vm0, %v40_v25 }
  0x1c   :  { %575 = vmatpush.xpose.msk.msra.mxu2 %vm85_vm0, %v56_v26 }
  0x1d   :  { %592 = vmatpush.xpose.msk.msra.mxu3 %vm85_vm0, %v72_v27 }
  0x1e   :  { %542 = vmatpush.xpose.msk.msra.mxu0 %vm85_vm0, %v23_v28 }
  0x1f   :  { %559 = vmatpush.xpose.msk.msra.mxu1 %vm85_vm0, %v39_v29 }
  0x20   :  { %576 = vmatpush.xpose.msk.msra.mxu2 %vm85_vm0, %v55_v30 }
  0x21   :  { %593 = vmatpush.xpose.msk.msra.mxu3 %vm85_vm0, %v71_v31 }
  0x22   :  { %543 = vmatpush.xpose.msk.msra.mxu0 %vm85_vm0, %v22_v32 }
  0x23   :  { %560 = vmatpush.xpose.msk.msra.mxu1 %vm85_vm0, %v38_v33 }
  0x24   :  { %577 = vmatpush.xpose.msk.msra.mxu2 %vm85_vm0, %v54_v34 }
  0x25   :  { %594 = vmatpush.xpose.msk.msra.mxu3 %vm85_vm0, %v70_v35 }
  0x26   :  { %544 = vmatpush.xpose.msk.msra.mxu0 %vm85_vm0, %v21_v37 }
  0x27   :  { %561 = vmatpush.xpose.msk.msra.mxu1 %vm85_vm0, %v37_v38 }
  0x28   :  { %578 = vmatpush.xpose.msk.msra.mxu2 %vm85_vm0, %v53_v39 }
  0x29   :  { %595 = vmatpush.xpose.msk.msra.mxu3 %vm85_vm0, %v69_v40 }
  0x2a   :  { %545 = vmatpush.xpose.msk.msra.mxu0 %vm85_vm0, %v20_v42 }
  0x2b   :  { %562 = vmatpush.xpose.msk.msra.mxu1 %vm85_vm0, %v36_v43 }
  0x2c   :  { %579 = vmatpush.xpose.msk.msra.mxu2 %vm85_vm0, %v52_v44 }
  0x2d   :  { %596 = vmatpush.xpose.msk.msra.mxu3 %vm85_vm0, %v68_v45 }
  0x2e   :  { %546 = vmatpush.xpose.msk.msra.mxu0 %vm85_vm0, %v19_v46 }
  0x2f   :  { %563 = vmatpush.xpose.msk.msra.mxu1 %vm85_vm0, %v35_v47 }
  0x30   :  { %580 = vmatpush.xpose.msk.msra.mxu2 %vm85_vm0, %v51_v48 }
  0x31   :  { %597 = vmatpush.xpose.msk.msra.mxu3 %vm85_vm0, %v67_v49 }
  0x32   :  { %547 = vmatpush.xpose.msk.msra.mxu0 %vm85_vm0, %v18_v50 }
  0x33   :  { %564 = vmatpush.xpose.msk.msra.mxu1 %vm85_vm0, %v34_v51 }
  0x34   :  { %581 = vmatpush.xpose.msk.msra.mxu2 %vm85_vm0, %v50_v52 }
  0x35   :  { %598 = vmatpush.xpose.msk.msra.mxu3 %vm85_vm0, %v66_v53 }
  0x36   :  { %548 = vmatpush.xpose.msk.msra.mxu0 %vm85_vm0, %v17_v54 }
  0x37   :  { %565 = vmatpush.xpose.msk.msra.mxu1 %vm85_vm0, %v33_v55 }
  0x38   :  { %582 = vmatpush.xpose.msk.msra.mxu2 %vm85_vm0, %v49_v56 }
  0x39   :  { %599 = vmatpush.xpose.msk.msra.mxu3 %vm85_vm0, %v65_v57 }
  0x3a   :  { %549 = vmatpush.xpose.msk.msra.mxu0 %vm85_vm0, %v16_v58 }
  0x3b   :  { %566 = vmatpush.xpose.msk.msra.mxu1 %vm85_vm0, %v32_v59 }
  0x3c   :  { %583 = vmatpush.xpose.msk.msra.mxu2 %vm85_vm0, %v48_v60 }
  0x3d   :  { %600 = vmatpush.xpose.msk.msra.mxu3 %vm85_vm0, %v64_v61 }
  0x3e   :  { %550 = vmatpush.xpose.msk.msra.mxu0 %vm85_vm0, %v15_v62 }
  0x3f   :  { %567 = vmatpush.xpose.msk.msra.mxu1 %vm85_vm0, %v31_v63 }
  0x40   :  { %584 = vmatpush.xpose.msk.msra.mxu2 %vm85_vm0, %v47_v0 }
  0x41   :  { %601 = vmatpush.xpose.msk.msra.mxu3 %vm85_vm0, %v63_v1  ;;  %551 = vmatmul.msk.f32.vlgmr.msra.gmra.mxu0 %vm85_vm0, %v14_v2 }
  0x42   :  { %568 = vmatmul.msk.f32.vlgmr.msra.gmra.mxu1 %vm85_vm0, %v14_v2 }
  0x43   :  { %585 = vmatmul.msk.f32.vlgmr.msra.gmra.mxu2 %vm85_vm0, %v14_v2 }
  0x44   :  { %602 = vmatmul.msk.f32.vlgmr.msra.gmra.mxu3 %vm85_vm0, %v14_v2 }
  0x80   :  { %v83_v3 = vpop.permute.xlu0 %82 }
  0xbe   :  { %v298_v4 = vpop.f32.mrf.mxu0 }
  0xbf   :  { %v318_v5 = vpop.f32.mrf.mxu1  ;;  %v299_v6 = vadd.f32 %v298_v4, %v83_v3 }
  0xc0   :  { %v319_v7 = vadd.f32 %v318_v5, %v83_v3 }
  0xc1   :  { %v362_v8 = vsel %vm361_vm1, %v299_v6, -inf }
  0xc2   :  { %v369_v9 = vsel %vm361_vm1, %v319_v7, -inf  ;;  %v363_v10 = vrot.slane %v362_v8, 4 }
  0xc3   :  { %v370_v11 = vrot.slane %v369_v9, 4 }
  0xc4   :  { %v364_v12 = vmax.f32 %v362_v8, %v363_v10 }
  0xc5   :  { %v371_v13 = vmax.f32 %v369_v9, %v370_v11 }
  0xc6   :  { %v338_v14 = vpop.f32.mrf.mxu2  ;;  %v365_v16 = vrot.slane %v364_v12, 2 }
  0xc7   :  { %v358_v15 = vpop.f32.mrf.mxu3  ;;  %v372_v17 = vrot.slane %v371_v13, 2  ;;  %v339_v18 = vadd.f32 %v338_v14, %v83_v3 }
  0xc8   :  { %v359_v19 = vadd.f32 %v358_v15, %v83_v3  ;;  %v366_v20 = vmax.f32 %v364_v12, %v365_v16 }
  0xc9   :  { %v373_v21 = vmax.f32 %v371_v13, %v372_v17  ;;  %v376_v22 = vsel %vm361_vm1, %v339_v18, -inf }
  0xca   :  { %v383_v23 = vsel %vm361_vm1, %v359_v19, -inf  ;;  %v377_v24 = vrot.slane %v376_v22, 4  ;;  %v367_v26 = vrot.slane %v366_v20, 1 }
  0xcb   :  { %v384_v25 = vrot.slane %v383_v23, 4  ;;  %v374_v27 = vrot.slane %v373_v21, 1 }
  0xcc   :  { %v378_v28 = vmax.f32 %v376_v22, %v377_v24  ;;  %v368_v30 = vmax.f32 %v366_v20, %v367_v26 }
  0xcd   :  { %v385_v29 = vmax.f32 %v383_v23, %v384_v25  ;;  %v375_v31 = vmax.f32 %v373_v21, %v374_v27 }
  0xce   :  { %v379_v32 = vrot.slane %v378_v28, 2  ;;  %v390_v34 = vsub.f32 %v299_v6, %v368_v30 }
  0xcf   :  { %v386_v33 = vrot.slane %v385_v29, 2  ;;  %v391_v35 = vsub.f32 %v319_v7, %v375_v31 }
  0xd0   :  { %v380_v36 = vmax.f32 %v378_v28, %v379_v32  ;;  %v394_v38 = vmul.f32 1.442695, %v390_v34 }
  0xd1   :  { %v387_v37 = vmax.f32 %v385_v29, %v386_v33  ;;  %v396_v39 = vmul.f32 1.442695, %v391_v35 }
  0xd2   :  { %v381_v40 = vrot.slane %v380_v36, 1  ;;  %605 = vpow2.f32 %v394_v38 }
  0xd3   :  { %v388_v41 = vrot.slane %v387_v37, 1  ;;  %607 = vpow2.f32 %v396_v39 }
  0xd4   :  { %v382_v42 = vmax.f32 %v380_v36, %v381_v40 }
  0xd5   :  { %v389_v43 = vmax.f32 %v387_v37, %v388_v41 }
  0xd6   :  { %v392_v44 = vsub.f32 %v339_v18, %v382_v42 }
  0xd7   :  { %v393_v45 = vsub.f32 %v359_v19, %v389_v43 }
  0xd8   :  { %v398_v46 = vmul.f32 1.442695, %v392_v44  ;;  %v606_v48 = vpop.eup %605 }
  0xd9   :  { %v400_v47 = vmul.f32 1.442695, %v393_v45  ;;  %v608_v49 = vpop.eup %607  ;;  %v402_v50 = vsel %vm361_vm1, %v606_v48, 0.0 }
  0xda   :  { %609 = vpow2.f32 %v398_v46  ;;  %v403_v51 = vrot.slane %v402_v50, 4  ;;  %v409_v52 = vsel %vm361_vm1, %v608_v49, 0.0 }
  0xdb   :  { %611 = vpow2.f32 %v400_v47  ;;  %v410_v53 = vrot.slane %v409_v52, 4 }
  0xdc   :  { %v404_v54 = vadd.f32 %v403_v51, %v402_v50 }
  0xdd   :  { %v411_v55 = vadd.f32 %v410_v53, %v409_v52 }
  0xde   :  { %v405_v56 = vrot.slane %v404_v54, 2 }
  0xdf   :  { %v412_v58 = vrot.slane %v411_v55, 2 }
  0xe0   :  { %v610_v57 = vpop.eup %609  ;;  %v406_v60 = vadd.f32 %v405_v56, %v404_v54 }
  0xe1   :  { %v612_v59 = vpop.eup %611  ;;  %v416_v61 = vsel %vm361_vm1, %v610_v57, 0.0  ;;  %v413_v62 = vadd.f32 %v412_v58, %v411_v55 }
  0xe2   :  { %v417_v63 = vrot.slane %v416_v61, 4  ;;  %v423_v0 = vsel %vm361_vm1, %v612_v59, 0.0  ;;  %v407_v1 = vrot.slane %v406_v60, 1 }
  0xe3   :  { %v424_v2 = vrot.slane %v423_v0, 4  ;;  %v414_v3 = vrot.slane %v413_v62, 1 }
  0xe4   :  { %v418_v4 = vadd.f32 %v417_v63, %v416_v61  ;;  %v408_v5 = vadd.f32 %v407_v1, %v406_v60 }
  0xe5   :  { %v425_v6 = vadd.f32 %v424_v2, %v423_v0  ;;  %v415_v7 = vadd.f32 %v414_v3, %v413_v62 }
  0xe6   :  { %v419_v8 = vrot.slane %v418_v4, 2  ;;  %613 = vrcp.f32 %v408_v5  ;;  %v439_v20 = vand.u32 2147483647, %v408_v5  ;;  %v441_v21 = vand.u32 2147483648, %v408_v5 }
  0xe7   :  { %615 = vrcp.f32 %v415_v7  ;;  %v426_v10 = vrot.slane %v425_v6, 2  ;;  %vm435_vm3 = vweird.f32 %v408_v5 }
  0xe8   :  { %v420_v9 = vadd.f32 %v419_v8, %v418_v4  ;;  %v442_v25 = vor.u32 1.1754944e-38, %v441_v21  ;;  %vm440_vm5 = vcmp.eq.f32.partialorder %v439_v20, 8.507059e+37 }
  0xe9   :  { %v427_v12 = vadd.f32 %v426_v10, %v425_v6 }
  0xea   :  { %v421_v11 = vrot.slane %v420_v9, 1 }
  0xeb   :  { %v428_v15 = vrot.slane %v427_v12, 1 }
  0xec   :  { %v614_v13 = vpop.eup %613  ;;  %v422_v14 = vadd.f32 %v421_v11, %v420_v9 }
  0xed   :  { %v616_v16 = vpop.eup %615  ;;  %v431_v17 = vmul.f32 %v614_v13, %v408_v5  ;;  %v429_v19 = vadd.f32 %v428_v15, %v427_v12  ;;  %vm436_vm2 = vweird.f32 %v614_v13 }
  0xee   :  { %617 = vrcp.f32 %v422_v14  ;;  %vm437_vm4 = vmor %vm435_vm3, %vm436_vm2 }
  0xef   :  { %v432_v18 = vsub.f32 1.0, %v431_v17  ;;  %619 = vrcp.f32 %v429_v19 }
  0xf1   :  { %v433_v22 = vmul.f32 %v614_v13, %v432_v18 }
  0xf3   :  { %v434_v23 = vadd.f32 %v614_v13, %v433_v22 }
  0xf4   :  { %v618_v24 = vpop.eup %617 }
  0xf5   :  { %v438_v26 = vsel %vm437_vm4, %v614_v13, %v434_v23  ;;  %v620_v28 = vpop.eup %619 }
  0xf6   :  { %v443_v27 = vsel %vm440_vm5, %v442_v25, %v438_v26 }
  0xf7   :  { %v444_v29 = vmul.f32 %v606_v48, %v443_v27 }
  0xf9   :  { %490 = vst [vmem:[#allocation2 + $0x10] sm:$0x1f] %v444_v29 }
 0x100   :  { %v524_v30 = vld [vmem:[#allocation2 + $0x10] sm:$0xff] }
 0x101   :  { %525 = vst [vmem:[%s922_s3] sm:$0xff] %v524_v30 }

</bundles_post_ra>
